<compile_context>
chip_gen: v7x
topology: tpu7x:2x2x1
jax: 0.10.0
libtpu: 0.0.40
codegen_flags: <defaults>
</compile_context>

<pallas_src>
import functools

import jax
import jax.numpy as jnp
from jax.experimental import pallas as pl
from jax.experimental.pallas import tpu as pltpu


def _round_up(a, m):
    return ((a + m - 1) // m) * m


def _convex_stock_kernel(x_ref, s_ref, w_ref, o_ref):
    """One (batch-tile, region-chunk) grid step.

    x_ref : (tm, F)   batch tile (block index constant across the region axis)
    s_ref : (F, tr)   gating weight chunk  S[:, r*tr:(r+1)*tr]
    w_ref : (F, tr)   value  weight chunk  (U - V)[:, r*tr:(r+1)*tr]
    o_ref : (1, tm)   lane-dense per-row accumulator, resident across region axis
    """
    r = pl.program_id(1)

    @pl.when(r == 0)
    def _():
        o_ref[...] = jnp.zeros_like(o_ref)

    x = x_ref[...]
    # Two MXU matmuls, f32 accumulation regardless of input dtype.
    xs = jnp.dot(x, s_ref[...], preferred_element_type=jnp.float32)  # X @ S chunk
    xw = jnp.dot(x, w_ref[...], preferred_element_type=jnp.float32)  # X @ (U-V) chunk

    # sign(relu(xs)) * xw  ==  where(xs > 0, xw, 0)  (no Dmat materialization)
    gated = jnp.where(xs > 0, xw, 0.0)

    # Partial row-sum for this region chunk, accumulated into the resident output row.
    o_ref[...] += jnp.sum(gated, axis=1)[None, :]


def prepare_weights(U, V, S, *, region_chunk=512, matmul_dtype=jnp.float32):
    """Per-parameter-update weight prep (call once, reuse across forward calls).

    Returns (S_p, W_p), each (F, r_pad): W = U - V precomputed, regions
    zero-padded to a 128 multiple (and to a region_chunk multiple when chunked)
    so all lane splits land on vreg tile boundaries. Zero-padded region columns
    contribute exactly 0 (gate 0>0 is False and xw is 0).

    matmul_dtype=jnp.bfloat16 halves X/weight HBM traffic and runs the MXU at
    full rate on v5e/v6e/v7x; note the gating sign can flip where |X@S| ~ 0
    under bf16 rounding (whole regions toggle). Default f32 matches PyTorch.
    """
    F, R = S.shape
    assert U.shape == (F, R) and V.shape == (F, R)
    assert region_chunk % 128 == 0

    r_pad = _round_up(max(R, 1), 128)
    if r_pad > region_chunk:
        r_pad = _round_up(r_pad, region_chunk)

    S_p = S.astype(jnp.float32)
    W_p = (U - V).astype(jnp.float32)
    if r_pad != R:
        pad = [(0, 0), (0, r_pad - R)]
        S_p = jnp.pad(S_p, pad)
        W_p = jnp.pad(W_p, pad)
    return S_p.astype(matmul_dtype), W_p.astype(matmul_dtype)


def _choose_batch_tiling(B, tm_max):
    """Pick (batch tile, padded batch). Small batches: one tile, padded only to
    a multiple of 8. Large batches: tile is a multiple of 128 (it is the lane
    dim of the output block), sized for >= ~8 grid steps, capped at tm_max."""
    b8 = _round_up(max(B, 1), 8)
    if b8 <= 256:
        return b8, b8
    tm = min(_round_up(tm_max, 128), max(128, _round_up(pl.cdiv(b8, 8), 128)))
    b_pad = _round_up(b8, tm)
    return tm, b_pad


def convex_stock_net_forward(x, S_p, W_p, *, tm_max=1024, region_chunk=512):
    """Pallas ConvexStockNet.forward. S_p/W_p come from prepare_weights().

    Returns shape (batch,) float32.
    """
    B, F = x.shape
    Fw, Rp = S_p.shape
    assert F == Fw and W_p.shape == (F, Rp) and Rp % 128 == 0
    assert region_chunk % 128 == 0

    # --- batch tiling (padded rows are zero -> contribute 0, sliced off) -------
    tm, b_pad = _choose_batch_tiling(B, tm_max)
    g = b_pad // tm

    # --- region chunking (second, "arbitrary", grid axis) ----------------------
    if Rp > region_chunk and Rp % region_chunk == 0:
        tr = region_chunk
    else:
        tr = Rp
    gr = Rp // tr

    x_in = x.astype(S_p.dtype)
    if b_pad != B:
        x_in = jnp.pad(x_in, [(0, b_pad - B), (0, 0)])

    # --- VMEM budget (explicit, with headroom; floor at the v5e default) -------
    in_item = jnp.dtype(S_p.dtype).itemsize
    w_bufs = 1 if gr == 1 else 2
    vmem_est = (
        2 * tm * F * in_item              # x tile, double-buffered
        + 2 * w_bufs * F * tr * in_item   # S and W chunks
        + 2 * tm * 4                      # output row
        + 3 * tm * tr * 4                 # xs / xw / gated f32 intermediates
    )
    vmem_limit = int(min(48 * 1024 * 1024, max(16 * 1024 * 1024, 2 * vmem_est)))

    # Weights with a constant block index need only a single buffer.
    if gr == 1:
        s_spec = pl.BlockSpec((F, tr), lambda i, r: (0, r),
                              pipeline_mode=pl.Buffered(1))
        w_spec = pl.BlockSpec((F, tr), lambda i, r: (0, r),
                              pipeline_mode=pl.Buffered(1))
    else:
        s_spec = pl.BlockSpec((F, tr), lambda i, r: (0, r))
        w_spec = pl.BlockSpec((F, tr), lambda i, r: (0, r))

    cost = pl.CostEstimate(
        flops=2 * b_pad * F * (2 * Rp),
        transcendentals=0,
        bytes_accessed=(b_pad * F + 2 * F * Rp) * in_item + b_pad * 4,
    )

    out = pl.pallas_call(
        _convex_stock_kernel,
        out_shape=jax.ShapeDtypeStruct((1, b_pad), jnp.float32),
        grid_spec=pltpu.PrefetchScalarGridSpec(
            num_scalar_prefetch=0,
            grid=(g, gr),                                        # reduction axis last
            in_specs=[
                pl.BlockSpec((tm, F), lambda i, r: (i, 0)),      # X batch tile
                s_spec,                                          # S region chunk
                w_spec,                                          # (U - V) region chunk
            ],
            out_specs=pl.BlockSpec((1, tm), lambda i, r: (0, i)),  # lane-dense row
        ),
        compiler_params=pltpu.CompilerParams(
            dimension_semantics=("parallel", "arbitrary"),
            vmem_limit_bytes=vmem_limit,
        ),
        cost_estimate=cost,
    )(x_in, S_p, W_p)

    return out[0, :B]


def init_params(key, n_features, n_regions):
    """Deterministic synthetic parameters mirroring the PyTorch __init__ shapes."""
    k_u, k_v, k_s = jax.random.split(key, 3)
    std = 1.0 / n_regions
    U = jax.random.normal(k_u, (n_features, n_regions), jnp.float32) * std
    V = jax.random.normal(k_v, (n_features, n_regions), jnp.float32) * std
    S = jax.random.normal(k_s, (n_features, n_regions), jnp.float32)
    return U, V, S


def _reference(x, U, V, S):
    xs = x @ S
    return jnp.sum(jnp.where(xs > 0, x @ (U - V), 0.0), axis=1)


if __name__ == "__main__":
    key = jax.random.PRNGKey(0)
    k_x, k_p = jax.random.split(key)

    # Small-batch path: single tile, batch padded only to a multiple of 8.
    batch, n_features, n_regions = 16, 32, 128
    x = jax.random.normal(k_x, (batch, n_features), jnp.float32)
    U, V, S = init_params(k_p, n_features, n_regions)

    S_p, W_p = prepare_weights(U, V, S)            # once per parameter update
    y = jax.block_until_ready(convex_stock_net_forward(x, S_p, W_p))
    y_ref = _reference(x, U, V, S)
    assert y.shape == (batch,)
    assert jnp.allclose(y, y_ref, atol=1e-4, rtol=1e-4)

    # Multi-tile batch + region-chunked reduction path (g > 1, gr > 1).
    batch2, n_regions2 = 512, 640
    x2 = jax.random.normal(jax.random.PRNGKey(1), (batch2, n_features), jnp.float32)
    U2, V2, S2 = init_params(jax.random.PRNGKey(2), n_features, n_regions2)
    S2_p, W2_p = prepare_weights(U2, V2, S2, region_chunk=256)
    y2 = jax.block_until_ready(
        convex_stock_net_forward(x2, S2_p, W2_p, region_chunk=256))
    y2_ref = _reference(x2, U2, V2, S2)
    assert y2.shape == (batch2,)
    assert jnp.allclose(y2, y2_ref, atol=1e-3, rtol=1e-3)

    # TODO(synk): the PyTorch train() method is a host-side SGD loop and is not part
    # of the forward pass; only forward() is implemented as a kernel.
    print("KERNEL_OK")
</pallas_src>

<mosaic_0001>
module attributes {stable_mosaic.version = 11 : i64} {
  func.func @_convex_stock_kernel(%arg0: i32, %arg1: i32, %arg2: memref<16x32xf32, #tpu.memory_space<vmem>>, %arg3: memref<32x128xf32, #tpu.memory_space<vmem>>, %arg4: memref<32x128xf32, #tpu.memory_space<vmem>>, %arg5: memref<1x16xf32, #tpu.memory_space<vmem>>) attributes {dimension_semantics = [#tpu.dimension_semantics<parallel>, #tpu.dimension_semantics<arbitrary>], iteration_bounds = array<i64: 1, 1>, scalar_prefetch = 0 : i64, scratch_operands = 0 : i64, tpu.core_type = #tpu.core_type<tc>, window_params = [{transform_indices = @transform_0, window_bounds = array<i64: 16, 32>}, {pipeline_mode = #tpu.pipeline_mode<synchronous>, transform_indices = @transform_1, window_bounds = array<i64: 32, 128>}, {pipeline_mode = #tpu.pipeline_mode<synchronous>, transform_indices = @transform_2, window_bounds = array<i64: 32, 128>}, {transform_indices = @transform_3, window_bounds = array<i64: 1, 16>}]} {
    %c0_i32 = arith.constant 0 : i32
    %0 = arith.cmpi eq, %arg1, %c0_i32 : i32
    %1 = arith.extui %0 : i1 to i32
    %c0_i32_0 = arith.constant 0 : i32
    %2 = arith.cmpi ne, %1, %c0_i32_0 : i32
    scf.if %2 {
      %cst_14 = arith.constant 0.000000e+00 : f32
      %17 = vector.broadcast %cst_14 : f32 to vector<1x16xf32>
      %c0_15 = arith.constant 0 : index
      %c0_16 = arith.constant 0 : index
      %18 = vector.load %arg5[%c0_15, %c0_16] : memref<1x16xf32, #tpu.memory_space<vmem>>, vector<1x16xf32>
      tpu.vector_store %arg5[%c0_15, %c0_16], %17 {strides = array<i32>} : memref<1x16xf32, #tpu.memory_space<vmem>>, vector<1x16xf32>,
    } else {
    }
    %c0 = arith.constant 0 : index
    %c0_1 = arith.constant 0 : index
    %3 = vector.load %arg2[%c0, %c0_1] : memref<16x32xf32, #tpu.memory_space<vmem>>, vector<16x32xf32>
    %c0_2 = arith.constant 0 : index
    %c0_3 = arith.constant 0 : index
    %4 = vector.load %arg3[%c0_2, %c0_3] : memref<32x128xf32, #tpu.memory_space<vmem>>, vector<32x128xf32>
    %cst = arith.constant dense<0.000000e+00> : vector<16x128xf32>
    %5 = tpu.matmul %3, %4, %cst {dimension_numbers = #tpu.dot_dimension_numbers<[1], [0], [0], [1], [0, 0, 1, 1], [], []>} : vector<16x32xf32>, vector<32x128xf32>, vector<16x128xf32> -> vector<16x128xf32>
    %c0_4 = arith.constant 0 : index
    %c0_5 = arith.constant 0 : index
    %6 = vector.load %arg4[%c0_4, %c0_5] : memref<32x128xf32, #tpu.memory_space<vmem>>, vector<32x128xf32>
    %cst_6 = arith.constant dense<0.000000e+00> : vector<16x128xf32>
    %7 = tpu.matmul %3, %6, %cst_6 {dimension_numbers = #tpu.dot_dimension_numbers<[1], [0], [0], [1], [0, 0, 1, 1], [], []>} : vector<16x32xf32>, vector<32x128xf32>, vector<16x128xf32> -> vector<16x128xf32>
    %cst_7 = arith.constant 0.000000e+00 : f32
    %8 = vector.broadcast %cst_7 : f32 to vector<16x128xf32>
    %9 = arith.cmpf ogt, %5, %8 : vector<16x128xf32>
    %cst_8 = arith.constant 0.000000e+00 : f32
    %10 = vector.broadcast %cst_8 : f32 to vector<16x128xf32>
    %11 = arith.select %9, %7, %10 : vector<16x128xi1>, vector<16x128xf32>
    %c0_9 = arith.constant 0 : index
    %c0_10 = arith.constant 0 : index
    %12 = vector.load %arg5[%c0_9, %c0_10] : memref<1x16xf32, #tpu.memory_space<vmem>>, vector<1x16xf32>
    %cst_11 = arith.constant dense<0.000000e+00> : vector<16xf32>
    %13 = vector.multi_reduction <add>, %11, %cst_11 [1] : vector<16x128xf32> to vector<16xf32>
    %14 = vector.shape_cast %13 : vector<16xf32> to vector<1x16xf32>
    %15 = arith.addf %12, %14 : vector<1x16xf32>
    %c0_12 = arith.constant 0 : index
    %c0_13 = arith.constant 0 : index
    %16 = vector.load %arg5[%c0_12, %c0_13] : memref<1x16xf32, #tpu.memory_space<vmem>>, vector<1x16xf32>
    tpu.vector_store %arg5[%c0_12, %c0_13], %15 {strides = array<i32>} : memref<1x16xf32, #tpu.memory_space<vmem>>, vector<1x16xf32>,
    return
  }
  func.func @transform_0(%arg0: i32, %arg1: i32) -> (i32, i32) {
    %c0_i32 = arith.constant 0 : i32
    %c0_i32_0 = arith.constant 0 : i32
    return %arg0, %c0_i32 : i32, i32
  }
  func.func @transform_1(%arg0: i32, %arg1: i32) -> (i32, i32) {
    %c0_i32 = arith.constant 0 : i32
    %c0_i32_0 = arith.constant 0 : i32
    return %c0_i32, %arg1 : i32, i32
  }
  func.func @transform_2(%arg0: i32, %arg1: i32) -> (i32, i32) {
    %c0_i32 = arith.constant 0 : i32
    %c0_i32_0 = arith.constant 0 : i32
    return %c0_i32, %arg1 : i32, i32
  }
  func.func @transform_3(%arg0: i32, %arg1: i32) -> (i32, i32) {
    %c0_i32 = arith.constant 0 : i32
    %c0_i32_0 = arith.constant 0 : i32
    return %c0_i32, %arg0 : i32, i32
  }
}

</mosaic_0001>

<bundles_post_ra>
// kernel: tpu_custom_call.1
= control target key start
LH: loop header
LB: loop body
LE: loop exit
PB: predicated region body
PF: predicated region fallthrough
CT: control target
= control target key end

     0   :  { %8 = vsyncpa [#allocation3], 0  ;;  %s742_s0 = inlined_call_operand.hbm [shape: f32[16,32], index: 0, kind: input, shape index: {}]   ;;  %s743_s1 = inlined_call_operand.hbm [shape: f32[32,128], index: 1, kind: input, shape index: {}]   ;;  %s744_s2 = inlined_call_operand.hbm [shape: f32[32,128], index: 2, kind: input, shape index: {}]   ;;  %s745_s3 = inlined_call_operand.hbm [shape: f32[1,16], index: 3, kind: output, shape index: {}]  }
   0x1   :  { %9 = vsyncpa [#allocation6], 0 }
   0x2   :  { %10 = vsyncpa [#allocation4], 0  ;;  %s614_s12 = smov [#allocation5]   ;;  %s615_s14 = smov [#allocation2]  }
   0x3   :  { %s28_s13 = sshll.u32 %s614_s12, 4  ;;  %s16_s15 = sshll.u32 %s615_s14, 4  ;;  %s29_s13 = int_to_ptr.vmem [resolvable:$true] %s28_s13  ;;  %s643_s15 = int_to_ptr.vmem [resolvable:$true] %s16_s15 }
   0x4   :  { %s520_s18 = scalar_lea.hbm %s743_s1, 512 }
   0x5   :  { %p521_p0 = scmp.ne.s32.totalorder %s743_s1, %s520_s18  ;;  %p524_p1 = scmp.lt.u32.totalorder %s520_s18, %s743_s1 }
   0x7   :  { %p526_p2 = pnand %p524_p1, %p521_p0 }
   0x9   :  { %529 = shalt.err (!%p526_p2)
}
   0xa   :  { %s530_s23 = scalar_lea.vmem %s29_s13, 512  ;;  %p535_p4 = scmp.lt.s32.totalorder %s29_s13, %s29_s13 }
   0xb   :  { %p531_p3 = scmp.ne.s32.totalorder %s29_s13, %s530_s23  ;;  %p536_p5 = scmp.lt.s32.totalorder %s530_s23, %s530_s23 }
   0xd   :  { %p537_p6 = por %p536_p5, %p535_p4 }
   0xf   :  { %p538_p7 = pnand %p537_p6, %p531_p3 }
  0x11   :  { %541 = shalt.err (!%p538_p7)
}
  0x12   :  { %s616_s24 = smov 128   ;;  %s617_s25 = smov 8  }
  0x13   :  { %34 = dma.hbm_to_vmem [thread:$0]  %s743_s1, 512, %s29_s13, [#allocation6], %s616_s24, %s616_s24, %s617_s25  }
  0x14   :  { %s542_s30 = scalar_lea.hbm %s742_s0, 256 }
  0x15   :  { %p543_p8 = scmp.ne.s32.totalorder %s742_s0, %s542_s30  ;;  %p546_p9 = scmp.lt.u32.totalorder %s542_s30, %s742_s0 }
  0x17   :  { %p548_p10 = pnand %p546_p9, %p543_p8 }
  0x19   :  { %551 = shalt.err (!%p548_p10)
}
  0x1a   :  { %s552_s8 = scalar_lea.vmem %s643_s15, 256  ;;  %p557_p12 = scmp.lt.s32.totalorder %s643_s15, %s643_s15 }
  0x1b   :  { %p553_p11 = scmp.ne.s32.totalorder %s643_s15, %s552_s8  ;;  %p558_p13 = scmp.lt.s32.totalorder %s552_s8, %s552_s8 }
  0x1d   :  { %p559_p0 = por %p558_p13, %p557_p12 }
  0x1f   :  { %p560_p1 = pnand %p559_p0, %p553_p11 }
  0x21   :  { %563 = shalt.err (!%p560_p1)
}
  0x22   :  { %22 = dma.hbm_to_vmem [thread:$0]  %s742_s0, 256, %s643_s15, [#allocation3], %s616_s24, %s616_s24, %s617_s25  }
  0x23   :  { %s618_s10 = smov [#allocation7]   ;;  %s564_s14 = scalar_lea.hbm %s744_s2, 512 }
  0x24   :  { %s40_s11 = sshll.u32 %s618_s10, 4  ;;  %p565_p2 = scmp.ne.s32.totalorder %s744_s2, %s564_s14  ;;  %s41_s11 = int_to_ptr.vmem [resolvable:$true] %s40_s11 }
  0x25   :  { %p568_p3 = scmp.lt.u32.totalorder %s564_s14, %s744_s2 }
  0x27   :  { %p570_p4 = pnand %p568_p3, %p565_p2 }
  0x29   :  { %573 = shalt.err (!%p570_p4)
}
  0x2a   :  { %s574_s20 = scalar_lea.vmem %s41_s11, 512  ;;  %p579_p6 = scmp.lt.s32.totalorder %s41_s11, %s41_s11 }
  0x2b   :  { %p575_p5 = scmp.ne.s32.totalorder %s41_s11, %s574_s20  ;;  %p580_p7 = scmp.lt.s32.totalorder %s574_s20, %s574_s20 }
  0x2d   :  { %p581_p8 = por %p580_p7, %p579_p6 }
  0x2f   :  { %p582_p9 = pnand %p581_p8, %p575_p5 }
  0x31   :  { %585 = shalt.err (!%p582_p9)
}
  0x32   :  { %46 = dma.hbm_to_vmem [thread:$0]  %s744_s2, 512, %s41_s11, [#allocation6], %s616_s24, %s616_s24, %s617_s25  }
  0x33   :  { %608 = dma.done.wait [#allocation3], 256  }
  0x34   :  { %609 = vsyncadd [#allocation3], 4294967040 }
  0x35   :  { %610 = dma.done.wait [#allocation6], 1024  }
  0x36   :  { %611 = vsyncadd [#allocation6], 4294966272  ;;  %v64_v0 = vld [vmem:[#allocation5] sm:$0xff]  ;;  %v65_v1 = vld [vmem:[#allocation5 + $0x8] sm:$0xff]  ;;  %vm68_vm0 = vcmask 261120   ;;  %v619_v20 = vmov 0   ;;  %v240_v21 = vlaneseq }
  0x37   :  { %v150_v2 = vld [vmem:[#allocation7] sm:$0xff]  ;;  %v493_v3 = vpack.c.bf16 %v65_v1, %v64_v0  ;;  %v151_v4 = vld [vmem:[#allocation7 + $0x8] sm:$0xff]  ;;  %v66_v5 = vld [vmem:[#allocation5 + $0x10] sm:$0xff]  ;;  %518 = vset.pattern.permute.xlu1 %v619_v20  ;;  %519 = vset.pattern.permute.xlu0 %v619_v20  ;;  %v620_v22 = vmov 1966171168   ;;  %vm60_vm3 = vcmask 122880  }
  0x38   :  { %v67_v6 = vld [vmem:[#allocation5 + $0x18] sm:$0xff]  ;;  %v501_v7 = vpack.c.bf16 %v151_v4, %v150_v2  ;;  %v152_v9 = vld [vmem:[#allocation7 + $0x10] sm:$0xff]  ;;  %v309_v23 = vunpack.c.l.s4 %v620_v22  ;;  %v699_v24 = vshrl.u32 %v240_v21, 7  ;;  %vm419_vm4 = vcmask 130112   ;;  %s622_s2 = smov [#allocation8]  }
  0x39   :  { %v497_v8 = vpack.c.bf16 %v67_v6, %v66_v5  ;;  %v153_v10 = vld [vmem:[#allocation7 + $0x18] sm:$0xff]  ;;  %v62_v11 = vld [vmem:[#allocation2] sm:$0xff]  ;;  %494 = vmatprep.subr.bf16.mxu0 %v493_v3  ;;  %s445_s21 = sshll.u32 %s622_s2, 4  ;;  %s446_s21 = int_to_ptr.vmem [resolvable:$true] %s445_s21 }
  0x3a   :  { %v505_v12 = vpack.c.bf16 %v153_v10, %v152_v9  ;;  %479 = vmatprep.mubr.msk.f32.mxu0 %vm68_vm0, %v62_v11  ;;  %502 = vmatprep.subr.bf16.mxu1 %v501_v7  ;;  %v63_v13 = vld [vmem:[#allocation2 + $0x8] sm:$0xff]  ;;  %v310_v25 = vunpack.c.0.s8 %v309_v23  ;;  %v242_v26 = vsub.s32 0, %v699_v24  ;;  %v246_v27 = vsub.s32 1, %v699_v24  ;;  %s586_s22 = scalar_lea.vmem %s446_s21, 16  ;;  %s590_s23 = scalar_lea.vmem %s446_s21, 32 }
  0x3b   :  { %496 = vmatpush3.bf16.msra.mxu0 %v493_v3  ;;  %504 = vmatpush3.bf16.msra.mxu1 %v501_v7  ;;  %v250_v28 = vsub.s32 2, %v699_v24  ;;  %v254_v29 = vsub.s32 3, %v699_v24  ;;  %v258_v30 = vsub.s32 4, %v699_v24  ;;  %v262_v31 = vsub.s32 5, %v699_v24  ;;  %p587_p10 = scmp.ne.s32.totalorder %s446_s21, %s586_s22  ;;  %p591_p11 = scmp.lt.s32.totalorder %s446_s21, %s446_s21 }
  0x3c   :  { %498 = vmatprep.subr.bf16.mxu0 %v497_v8  ;;  %506 = vmatprep.subr.bf16.mxu1 %v505_v12  ;;  %v266_v32 = vsub.s32 6, %v699_v24  ;;  %v270_v33 = vsub.s32 7, %v699_v24  ;;  %v710_v35 = vsub.s32 %v310_v25, %v699_v24  ;;  %p592_p12 = scmp.lt.s32.totalorder %s590_s23, %s586_s22 }
  0x3d   :  { %490 = vmatprep.mubr.msk.f32.mxu1 %vm68_vm0, %v62_v11 }
  0x3e   :  { %p593_p13 = por %p592_p12, %p591_p11 }
  0x3f   :  { %500 = vmatpush3.bf16.msra.mxu0 %v497_v8  ;;  %508 = vmatpush3.bf16.msra.mxu1 %v505_v12 }
  0x40   :  { %p594_p0 = pnand %p593_p13, %p587_p10 }
  0x42   :  { %480 = vmatmul.mubr.msk.f32.vlgmr.msra.gmra.mrb[0].mxu0 %vm68_vm0, %v63_v13  ;;  %491 = vmatmul.mubr.msk.f32.vlgmr.msra.gmra.mrb[0].mxu1 %vm68_vm0, %v63_v13 }
 0x115   :  { %v481_v14 = vpop.f32.mrb[0].mxu0  ;;  %v492_v15 = vpop.f32.mrb[0].mxu1 }
 0x116   :  { %vm230_vm1 = vcmp.gt.f32.partialorder %v481_v14, 0.0  ;;  %v141_v16 = vpop.f32.mrb[1].mxu0  ;;  %v220_v17 = vpop.f32.mrb[1].mxu1 }
 0x117   :  { %vm229_vm2 = vcmp.gt.f32.partialorder %v141_v16, 0.0  ;;  %v232_v18 = vsel %vm230_vm1, %v492_v15, 0.0  ;;  %v621_v15 = vmov 0.0   ;;  %v409_v16 = vand.u32 127, %v240_v21 }
 0x118   :  { %v231_v19 = vsel %vm229_vm2, %v220_v17, 0.0  ;;  %61 = vst.msk [vmem:[#allocation8] sm:$0x1] %vm60_vm3, %v621_v15 }
 0x119   :  { %234 = vadd.xlane.f32.xlu0 %v231_v19  ;;  %v414_v17 = vadd.s32 4294967288, %v409_v16  ;;  %v412_v19 = vsub.s32 %v409_v16, %v699_v24 }
 0x11b   :  { %v417_v20 = vsub.s32 %v414_v17, %v699_v24 }
 0x11d   :  { %236 = vadd.xlane.f32.xlu0 %v232_v18 }
 0x1a6   :  { %v235_v34 = vpop.xlane.xlu0 %234 }
 0x1a7   :  { %v243_v36 = vrot.slane %v235_v34, %v242_v26  ;;  %v247_v37 = vrot.slane %v235_v34, %v246_v27  ;;  %v251_v38 = vrot.slane %v235_v34, %v250_v28  ;;  %v255_v39 = vrot.slane %v235_v34, %v254_v29 }
 0x1a8   :  { %v259_v40 = vrot.slane %v235_v34, %v258_v30  ;;  %v263_v41 = vrot.slane %v235_v34, %v262_v31  ;;  %v267_v42 = vrot.slane %v235_v34, %v266_v32  ;;  %v271_v43 = vrot.slane %v235_v34, %v270_v33 }
 0x1a9   :  { %v304_v44 = vcombine.low %v243_v36, %v247_v37  ;;  %v305_v45 = vcombine.low %v251_v38, %v255_v39 }
 0x1aa   :  { %v237_v46 = vpop.xlane.xlu0 %236  ;;  %v306_v47 = vcombine.low %v259_v40, %v263_v41  ;;  %v307_v48 = vcombine.low %v267_v42, %v271_v43 }
 0x1ab   :  { %v314_v49 = vrot.slane %v304_v44, %v710_v35  ;;  %v321_v50 = vrot.slane %v305_v45, %v710_v35  ;;  %v275_v51 = vrot.slane %v237_v46, %v242_v26  ;;  %v279_v52 = vrot.slane %v237_v46, %v246_v27 }
 0x1ac   :  { %v328_v53 = vrot.slane %v306_v47, %v710_v35  ;;  %v335_v54 = vrot.slane %v307_v48, %v710_v35  ;;  %v283_v55 = vrot.slane %v237_v46, %v250_v28  ;;  %v287_v56 = vrot.slane %v237_v46, %v254_v29  ;;  %v233_v28 = vld [vmem:[#allocation8] sm:$0x1] }
 0x1ad   :  { %v336_v57 = vcombine.low %v314_v49, %v321_v50  ;;  %v291_v58 = vrot.slane %v237_v46, %v258_v30  ;;  %v295_v59 = vrot.slane %v237_v46, %v262_v31  ;;  %v299_v60 = vrot.slane %v237_v46, %v266_v32 }
 0x1ae   :  { %v337_v61 = vcombine.low %v328_v53, %v335_v54  ;;  %v303_v62 = vrot.slane %v237_v46, %v270_v33  ;;  %v353_v63 = vcombine.low %v275_v51, %v279_v52  ;;  %v354_v0 = vcombine.low %v283_v55, %v287_v56 }
 0x1af   :  { %v344_v1 = vrot.slane %v336_v57, %v710_v35  ;;  %v355_v2 = vcombine.low %v291_v58, %v295_v59 }
 0x1b0   :  { %v351_v3 = vrot.slane %v337_v61, %v710_v35  ;;  %v356_v4 = vcombine.low %v299_v60, %v303_v62  ;;  %v363_v5 = vrot.slane %v353_v63, %v710_v35  ;;  %v370_v6 = vrot.slane %v354_v0, %v710_v35 }
 0x1b1   :  { %v377_v7 = vrot.slane %v355_v2, %v710_v35 }
 0x1b2   :  { %v352_v8 = vcombine.low %v344_v1, %v351_v3  ;;  %v384_v9 = vrot.slane %v356_v4, %v710_v35  ;;  %v385_v10 = vcombine.low %v363_v5, %v370_v6 }
 0x1b4   :  { %403 = vperm.xlu1 %518, %v352_v8   ;;  %v386_v11 = vcombine.low %v377_v7, %v384_v9  ;;  %v393_v12 = vrot.slane %v385_v10, %v710_v35 }
 0x1b6   :  { %v400_v13 = vrot.slane %v386_v11, %v710_v35 }
 0x1b8   :  { %v401_v14 = vcombine.low %v393_v12, %v400_v13 }
 0x1ba   :  { %406 = vperm.xlu1 %518, %v401_v14  }
 0x233   :  { %v404_v18 = vpop.permute.xlu1 %403 }
 0x234   :  { %v413_v23 = vrot.slane %v404_v18, %v412_v19 }
 0x239   :  { %v407_v22 = vpop.permute.xlu1 %406 }
 0x23a   :  { %v418_v25 = vrot.slane %v407_v22, %v417_v20 }
 0x23c   :  { %v420_v26 = vsel %vm419_vm4, %v418_v25, %v413_v23 }
 0x23d   :  { %v427_v27 = vrot.slane %v420_v26, %v710_v35 }
 0x23f   :  { %v434_v29 = vrot.slane %v427_v27, %v710_v35 }
 0x241   :  { %v436_v30 = vadd.f32 %v434_v29, %v233_v28 }
 0x243   :  { %438 = vst.msk [vmem:[#allocation8] sm:$0x1] %vm60_vm3, %v436_v30 }
 0x244   :  { %597 = shalt.err (!%p594_p0)
}
 0x245   :  { %s598_s26 = scalar_lea.hbm %s745_s3, 16 }
 0x246   :  { %p599_p1 = scmp.ne.s32.totalorder %s745_s3, %s598_s26  ;;  %p602_p2 = scmp.lt.u32.totalorder %s598_s26, %s745_s3 }
 0x248   :  { %p604_p3 = pnand %p602_p2, %p599_p1 }
 0x24a   :  { %607 = shalt.err (!%p604_p3)
}
 0x24b   :  { %448 = dma.vmem_to_hbm [thread:$0]  %s446_s21, 16, %s745_s3, [#allocation4]  }
 0x24c   :  { %612 = dma.done.wait [#allocation4], 16  }
 0x24d   :  { %613 = vsyncadd [#allocation4], 4294967280 }
 0x24e   :  { %452 = vsyncpa [#allocation3], 1 }
 0x24f   :  { %453 = vsyncpa [#allocation6], 1 }
 0x250   :  { %454 = vsyncpa [#allocation4], 1 }

</bundles_post_ra>
